<compile_context>
chip_gen: v5e
topology: v5e:2x2
jax: 0.10.0
libtpu: 0.0.40
codegen_flags: <defaults>
</compile_context>

<pallas_src>
import functools

import jax
import jax.numpy as jnp
import numpy as np
from jax import lax
from jax.experimental import pallas as pl
from jax.experimental.pallas import tpu as pltpu


# ---------------------------------------------------------------------------
# Hardware query (generation-aware VMEM / core-count)
# ---------------------------------------------------------------------------

def _tpu_target():
    """(vmem_capacity_bytes, has_two_tensorcores) with conservative fallbacks."""
    vmem = 64 * 1024 * 1024            # v7x floor -> safe default on every gen
    try:
        vmem = int(pltpu.get_tpu_info().vmem_capacity_bytes)
    except Exception:
        pass
    two_cores = False
    try:
        kind = jax.devices()[0].device_kind.lower()
        two_cores = ("v7" in kind) or ("7x" in kind)
    except Exception:
        pass
    return vmem, two_cores


# ---------------------------------------------------------------------------
# Host-side operator construction (cached per (H, W))
# ---------------------------------------------------------------------------

@functools.lru_cache(maxsize=None)
def _combined_operator_np(H, W):
    """Combined irfft2 operator K = [Kr; Ki], shape (2*H*Wh, H*W).

        out_flat[b, m*W+n] = sum_{h,k} ReX[b,h*Wh+k]*Kr[(h,k),(m,n)]
                                     + ImX[b,h*Wh+k]*Ki[(h,k),(m,n)]
        Kr =  (w_k/(H*W)) * cos(2*pi*(h*m/H + k*n/W))
        Ki = -(w_k/(H*W)) * sin(2*pi*(h*m/H + k*n/W))
    with w_k = 1 for the DC/Nyquist bins, 2 otherwise (norm='backward').
    Angles use integer products reduced mod the period (float64), so the
    DC/Nyquist imaginary parts are suppressed exactly as torch/pocketfft do.
    """
    Wh = W // 2 + 1
    hm = np.mod(np.outer(np.arange(H), np.arange(H)), H).astype(np.float64) / H    # (H, H)
    kn = np.mod(np.outer(np.arange(Wh), np.arange(W)), W).astype(np.float64) / W   # (Wh, W)
    ang = 2.0 * np.pi * (hm[:, None, :, None] + kn[None, :, None, :])              # (H, Wh, H, W)
    wk = np.where((np.arange(Wh) == 0) | (np.arange(Wh) == W // 2), 1.0, 2.0)
    scale = wk[None, :, None, None] / (H * W)
    Kr = (scale * np.cos(ang)).reshape(H * Wh, H * W)
    Ki = (-scale * np.sin(ang)).reshape(H * Wh, H * W)
    return np.concatenate([Kr, Ki], axis=0).astype(np.float32)                     # (2*H*Wh, H*W)


def _split_bf16_host(a_np):
    """f32 -> (hi, lo) bf16 device arrays with hi + lo ~= a (done once, outside kernel)."""
    a = jnp.asarray(a_np, dtype=jnp.float32)
    hi = a.astype(jnp.bfloat16)
    lo = (a - hi.astype(jnp.float32)).astype(jnp.bfloat16)
    return hi, lo


@functools.lru_cache(maxsize=None)
def _combined_operator(H, W):
    return _split_bf16_host(_combined_operator_np(H, W))          # (k_hi, k_lo)


@functools.lru_cache(maxsize=None)
def _twostage_operators(H, W):
    """Fallback operators: M1 = [[A,-B],[B,A]] (2H,2H) and S = [Cr; Ci] (2Wh,W)."""
    Wh = W // 2 + 1
    hh = np.mod(np.outer(np.arange(H), np.arange(H)), H).astype(np.float64)
    ah = 2.0 * np.pi * hh / H
    A = np.cos(ah) / H
    Bm = np.sin(ah) / H
    M1 = np.block([[A, -Bm], [Bm, A]]).astype(np.float32)          # (2H, 2H)
    kn = np.mod(np.outer(np.arange(Wh), np.arange(W)), W).astype(np.float64)
    aw = 2.0 * np.pi * kn / W
    wk = np.where((np.arange(Wh) == 0) | (np.arange(Wh) == W // 2), 1.0, 2.0)[:, None]
    Cr = wk * np.cos(aw) / W
    Ci = -wk * np.sin(aw) / W
    S = np.concatenate([Cr, Ci], axis=0).astype(np.float32)        # (2Wh, W): [Yre|Yim] @ S
    return _split_bf16_host(M1) + _split_bf16_host(S)              # (m1_hi, m1_lo, s_hi, s_lo)


# ---------------------------------------------------------------------------
# Kernels
# ---------------------------------------------------------------------------

def _split_bf16(v):
    hi = v.astype(jnp.bfloat16)
    lo = (v - hi.astype(jnp.float32)).astype(jnp.bfloat16)
    return hi, lo


def _dot3(a_hi, a_lo, b_hi, b_lo):
    """~Precision.HIGH matmul from 3 native bf16 MXU passes (lo*lo dropped)."""
    d = lambda u, v: jnp.dot(u, v, preferred_element_type=jnp.float32)
    return d(a_hi, b_hi) + d(a_lo, b_hi) + d(a_hi, b_lo)


def _irfft2_combined_kernel(x_ref, khi_ref, klo_ref, o_ref):
    # x_ref : (tb, 2*H*Wh) f32  -- [ReX_flat | ImX_flat] per slice (lane dense)
    # k*_ref: (2*H*Wh, H*W) bf16 -- combined operator, hi/lo pre-split on host
    # o_ref : (tb, H*W) f32      -- lane-dense flattened output
    x_hi, x_lo = _split_bf16(x_ref[...])
    o_ref[...] = _dot3(x_hi, x_lo, khi_ref[...], klo_ref[...]).astype(o_ref.dtype)


def _irfft2_twostage_kernel(x_ref, m1hi_ref, m1lo_ref, shi_ref, slo_ref, o_ref,
                            yre_scr, yim_scr):
    # Fallback for transforms whose combined operator does not fit in VMEM.
    # x_ref : (tb, 2H, Wh) -- [Re(X); Im(X)] stacked along axis 1, f32
    # m1*   : (2H, 2H)     -- [[A,-B],[B,A]], 1/H folded in (bf16 hi/lo)
    # s*    : (2Wh, W)     -- vstack(Cr, Ci), 1/W folded in (bf16 hi/lo)
    # o_ref : (tb, H, W)
    # scratch: (tb*H, Wh) f32 x2 -- stage-1 output (bounds live ranges)
    tb, h2, _ = x_ref.shape
    h = h2 // 2
    m1_hi = m1hi_ref[...]
    m1_lo = m1lo_ref[...]

    def body(b, carry):
        xb_hi, xb_lo = _split_bf16(x_ref[b])                 # (2H, Wh)
        y = _dot3(m1_hi, m1_lo, xb_hi, xb_lo)                # (2H, Wh) f32
        yre_scr[pl.ds(b * h, h), :] = y[:h]
        yim_scr[pl.ds(b * h, h), :] = y[h:]
        return carry

    lax.fori_loop(0, tb, body, 0, unroll=True)

    # Fused stage 2: single (tb*H, 2Wh) @ (2Wh, W) matmul, batch folded into M.
    ycat = jnp.concatenate([yre_scr[...], yim_scr[...]], axis=-1)   # (tb*H, 2Wh)
    y_hi, y_lo = _split_bf16(ycat)
    out = _dot3(y_hi, y_lo, shi_ref[...], slo_ref[...])             # (tb*H, W)
    o_ref[...] = out.reshape(tb, h, -1).astype(o_ref.dtype)


# ---------------------------------------------------------------------------
# Tiling
# ---------------------------------------------------------------------------

def _pick_tile(BC, per_slice_bytes, data_budget, two_cores, max_tb):
    """Slices per grid step: amortize pipeline overhead, stay inside VMEM."""
    tb = max(1, int(data_budget // max(1, per_slice_bytes)))
    tb = min(tb, max_tb)
    if two_cores and BC >= 16:
        # v7x only (2 TensorCores): keep the parallel grid >= 2 steps, but only
        # when each half stays a legal sublane-aligned block.
        tb = min(tb, (BC + 1) // 2)
    if tb >= BC:
        return BC                      # one full block (always a legal block shape)
    return max(8, (tb // 8) * 8)       # sublane-aligned tile when the grid > 1


# ---------------------------------------------------------------------------
# Wrappers
# ---------------------------------------------------------------------------

def _irfft2_combined(xcat_flat, BC, H, Wh, W, vmem_limit, two_cores):
    HWh, HW = H * Wh, H * W
    k_hi, k_lo = _combined_operator(H, W)
    const_bytes = 2 * (k_hi.size + k_lo.size) * 2          # double-buffered bf16 constants
    # Per slice: double-buffered f32 in/out blocks + in-kernel bf16 hi/lo split.
    per_slice = 2 * (2 * HWh * 4 + HW * 4) + 2 * HWh * 4
    budget = max(per_slice, vmem_limit - const_bytes - (4 << 20))
    tb = _pick_tile(BC, per_slice, budget, two_cores, max_tb=2048)

    grid = pl.cdiv(BC, tb)
    BCp = grid * tb
    if BCp != BC:
        xcat_flat = jnp.pad(xcat_flat, ((0, BCp - BC), (0, 0)))

    out = pl.pallas_call(
        _irfft2_combined_kernel,
        out_shape=jax.ShapeDtypeStruct((BCp, HW), jnp.float32),
        grid_spec=pltpu.PrefetchScalarGridSpec(
            num_scalar_prefetch=0,
            grid=(grid,),
            in_specs=[
                pl.BlockSpec((tb, 2 * HWh), lambda i: (i, 0)),
                pl.BlockSpec((2 * HWh, HW), lambda i: (0, 0)),   # grid-invariant operator
                pl.BlockSpec((2 * HWh, HW), lambda i: (0, 0)),
            ],
            out_specs=pl.BlockSpec((tb, HW), lambda i: (i, 0)),
        ),
        compiler_params=pltpu.CompilerParams(
            dimension_semantics=("parallel",),
            vmem_limit_bytes=vmem_limit,
        ),
    )(xcat_flat, k_hi, k_lo)
    return out[:BC]


def _irfft2_twostage(xcat, BC, H, Wh, W, vmem_limit, two_cores):
    m1_hi, m1_lo, s_hi, s_lo = _twostage_operators(H, W)
    const_bytes = (m1_hi.size + m1_lo.size + s_hi.size + s_lo.size) * 2   # single-buffered
    per_slice = 2 * (2 * H * Wh * 4 + H * W * 4) + 4 * H * Wh * 4 + 2 * H * W * 4
    budget = max(per_slice, vmem_limit - const_bytes - (4 << 20))
    tb = _pick_tile(BC, per_slice, budget, two_cores, max_tb=8)

    grid = pl.cdiv(BC, tb)
    BCp = grid * tb
    if BCp != BC:
        xcat = jnp.pad(xcat, ((0, BCp - BC), (0, 0), (0, 0)))

    def const_spec(shape):
        return pl.BlockSpec(shape, lambda i: (0, 0), pipeline_mode=pl.Buffered(1))

    out = pl.pallas_call(
        _irfft2_twostage_kernel,
        out_shape=jax.ShapeDtypeStruct((BCp, H, W), jnp.float32),
        grid_spec=pltpu.PrefetchScalarGridSpec(
            num_scalar_prefetch=0,
            grid=(grid,),
            in_specs=[
                pl.BlockSpec((tb, 2 * H, Wh), lambda i: (i, 0, 0)),
                const_spec((2 * H, 2 * H)), const_spec((2 * H, 2 * H)),
                const_spec((2 * Wh, W)), const_spec((2 * Wh, W)),
            ],
            out_specs=pl.BlockSpec((tb, H, W), lambda i: (i, 0, 0)),
            scratch_shapes=[pltpu.VMEM((tb * H, Wh), jnp.float32),
                            pltpu.VMEM((tb * H, Wh), jnp.float32)],
        ),
        compiler_params=pltpu.CompilerParams(
            dimension_semantics=("parallel",),
            vmem_limit_bytes=vmem_limit,
        ),
    )(xcat, m1_hi, m1_lo, s_hi, s_lo)
    return out[:BC]


def irfft2_pallas(x_re, x_im):
    """irfft2 of the complex half-spectrum (x_re + 1j*x_im), norm='backward'.

    Matches torch.fft.irfft2(x, norm='backward') for x of shape (B, C, H, W//2+1);
    output is real (B, C, H, W) with W = 2*(Wh-1) (torch's default even width;
    explicit odd output sizes via `s=` are not supported).
    """
    assert x_re.shape == x_im.shape
    B, C, H, Wh = x_re.shape
    assert Wh >= 2, "need at least two frequency bins along the last axis"
    W = 2 * (Wh - 1)
    BC = B * C

    vmem_cap, two_cores = _tpu_target()
    vmem_limit = min(int(vmem_cap * 3) // 4, 100 * 1024 * 1024)

    xre = x_re.reshape(BC, H * Wh).astype(jnp.float32)
    xim = x_im.reshape(BC, H * Wh).astype(jnp.float32)

    # Primary path: single combined-operator matmul, gated by operator VMEM size.
    op_bytes = 2 * (2 * H * Wh) * (H * W) * 2          # hi+lo bf16, one copy
    if 2 * op_bytes <= vmem_limit // 2:                # double-buffered constants fit easily
        xcat = jnp.concatenate([xre, xim], axis=-1)    # (BC, 2*H*Wh), lane dense
        out = _irfft2_combined(xcat, BC, H, Wh, W, vmem_limit, two_cores)
        return out.reshape(B, C, H, W)

    # Fallback for large transforms: two-stage (H transform, then fused W synthesis).
    xcat = jnp.concatenate([xre.reshape(BC, H, Wh), xim.reshape(BC, H, Wh)], axis=1)
    out = _irfft2_twostage(xcat, BC, H, Wh, W, vmem_limit, two_cores)
    return out.reshape(B, C, H, W)


if __name__ == "__main__":
    # Complex half-spectrum input (what torch.fft.irfft2 consumes), carried as
    # separate real/imag f32 arrays: (B, C, H, W//2+1) -> real output (B, C, H, W).
    B, C, H, Wh = 2, 4, 16, 9            # -> output (2, 4, 16, 16)
    k_re, k_im = jax.random.split(jax.random.PRNGKey(0))
    x_re = jax.random.normal(k_re, (B, C, H, Wh), dtype=jnp.float32)
    x_im = jax.random.normal(k_im, (B, C, H, Wh), dtype=jnp.float32)

    out = irfft2_pallas(x_re, x_im)
    jax.block_until_ready(out)

    # Reference: same semantics as torch.fft.irfft2(x, norm='backward').
    ref = jnp.fft.irfft2((x_re + 1j * x_im).astype(jnp.complex64), norm="backward")
    np.testing.assert_allclose(np.asarray(out), np.asarray(ref),
                               atol=2e-4, rtol=1e-3)
    print("KERNEL_OK")
</pallas_src>

<mosaic_0001>
module attributes {stable_mosaic.version = 11 : i64} {
  func.func @_irfft2_combined_kernel(%arg0: i32, %arg1: memref<8x288xf32, #tpu.memory_space<vmem>>, %arg2: memref<288x256xbf16, #tpu.memory_space<vmem>>, %arg3: memref<288x256xbf16, #tpu.memory_space<vmem>>, %arg4: memref<8x256xf32, #tpu.memory_space<vmem>>) attributes {dimension_semantics = [#tpu.dimension_semantics<parallel>], iteration_bounds = array<i64: 1>, scalar_prefetch = 0 : i64, scratch_operands = 0 : i64, tpu.core_type = #tpu.core_type<tc>, window_params = [{transform_indices = @transform_0, window_bounds = array<i64: 8, 288>}, {pipeline_mode = #tpu.pipeline_mode<synchronous>, transform_indices = @transform_1, window_bounds = array<i64: 288, 256>}, {pipeline_mode = #tpu.pipeline_mode<synchronous>, transform_indices = @transform_2, window_bounds = array<i64: 288, 256>}, {transform_indices = @transform_3, window_bounds = array<i64: 8, 256>}]} {
    %c0 = arith.constant 0 : index
    %c0_0 = arith.constant 0 : index
    %0 = vector.load %arg1[%c0, %c0_0] : memref<8x288xf32, #tpu.memory_space<vmem>>, vector<8x288xf32>
    %1 = arith.truncf %0 : vector<8x288xf32> to vector<8x288xbf16>
    %2 = arith.extf %1 : vector<8x288xbf16> to vector<8x288xf32>
    %3 = arith.subf %0, %2 : vector<8x288xf32>
    %4 = arith.truncf %3 : vector<8x288xf32> to vector<8x288xbf16>
    %c0_1 = arith.constant 0 : index
    %c0_2 = arith.constant 0 : index
    %5 = vector.load %arg2[%c0_1, %c0_2] : memref<288x256xbf16, #tpu.memory_space<vmem>>, vector<288x256xbf16>
    %c0_3 = arith.constant 0 : index
    %c0_4 = arith.constant 0 : index
    %6 = vector.load %arg3[%c0_3, %c0_4] : memref<288x256xbf16, #tpu.memory_space<vmem>>, vector<288x256xbf16>
    %cst = arith.constant dense<0.000000e+00> : vector<8x256xf32>
    %7 = tpu.matmul %1, %5, %cst {dimension_numbers = #tpu.dot_dimension_numbers<[1], [0], [0], [1], [0, 0, 1, 1], [], []>} : vector<8x288xbf16>, vector<288x256xbf16>, vector<8x256xf32> -> vector<8x256xf32>
    %cst_5 = arith.constant dense<0.000000e+00> : vector<8x256xf32>
    %8 = tpu.matmul %4, %5, %cst_5 {dimension_numbers = #tpu.dot_dimension_numbers<[1], [0], [0], [1], [0, 0, 1, 1], [], []>} : vector<8x288xbf16>, vector<288x256xbf16>, vector<8x256xf32> -> vector<8x256xf32>
    %9 = arith.addf %7, %8 : vector<8x256xf32>
    %cst_6 = arith.constant dense<0.000000e+00> : vector<8x256xf32>
    %10 = tpu.matmul %1, %6, %cst_6 {dimension_numbers = #tpu.dot_dimension_numbers<[1], [0], [0], [1], [0, 0, 1, 1], [], []>} : vector<8x288xbf16>, vector<288x256xbf16>, vector<8x256xf32> -> vector<8x256xf32>
    %11 = arith.addf %9, %10 : vector<8x256xf32>
    %c0_7 = arith.constant 0 : index
    %c0_8 = arith.constant 0 : index
    %12 = vector.load %arg4[%c0_7, %c0_8] : memref<8x256xf32, #tpu.memory_space<vmem>>, vector<8x256xf32>
    tpu.vector_store %arg4[%c0_7, %c0_8], %11 {strides = array<i32>} : memref<8x256xf32, #tpu.memory_space<vmem>>, vector<8x256xf32>,
    return
  }
  func.func @transform_0(%arg0: i32) -> (i32, i32) {
    %c0_i32 = arith.constant 0 : i32
    %c0_i32_0 = arith.constant 0 : i32
    return %arg0, %c0_i32 : i32, i32
  }
  func.func @transform_1(%arg0: i32) -> (i32, i32) {
    %c0_i32 = arith.constant 0 : i32
    %c0_i32_0 = arith.constant 0 : i32
    %c0_i32_1 = arith.constant 0 : i32
    return %c0_i32, %c0_i32_0 : i32, i32
  }
  func.func @transform_2(%arg0: i32) -> (i32, i32) {
    %c0_i32 = arith.constant 0 : i32
    %c0_i32_0 = arith.constant 0 : i32
    %c0_i32_1 = arith.constant 0 : i32
    return %c0_i32, %c0_i32_0 : i32, i32
  }
  func.func @transform_3(%arg0: i32) -> (i32, i32) {
    %c0_i32 = arith.constant 0 : i32
    %c0_i32_0 = arith.constant 0 : i32
    return %arg0, %c0_i32 : i32, i32
  }
}

</mosaic_0001>

<bundles_post_ra>
// kernel: tpu_custom_call.1
= control target key start
LH: loop header
LB: loop body
LE: loop exit
PB: predicated region body
PF: predicated region fallthrough
CT: control target
= control target key end

     0   :  { %8 = vsyncpa [#allocation3], 0  ;;  %s1474_s0 = inlined_call_operand.hbm [shape: f32[8,288], index: 0, kind: input, shape index: {}]   ;;  %s1475_s1 = inlined_call_operand.hbm [shape: bf16[288,256], index: 1, kind: input, shape index: {}]   ;;  %s1476_s2 = inlined_call_operand.hbm [shape: bf16[288,256], index: 2, kind: input, shape index: {}]   ;;  %s1477_s3 = inlined_call_operand.hbm [shape: f32[8,256], index: 3, kind: output, shape index: {}]  }
   0x1   :  { %9 = vsyncpa [#allocation6], 0  ;;  %s26_s14 = sshll.u32 %s1475_s1, 4  ;;  %s27_s14 = int_to_ptr.hbm [resolvable:$true] %s26_s14 }
   0x2   :  { %10 = vsyncpa [#allocation4], 0  ;;  %s1254_s15 = smov [#allocation5]   ;;  %s16_s19 = sshll.u32 %s1474_s0, 4  ;;  %s17_s19 = int_to_ptr.hbm [resolvable:$true] %s16_s19 }
   0x3   :  { %s28_s16 = sshll.u32 %s1254_s15, 4  ;;  %s1255_s20 = smov 128   ;;  %s29_s16 = int_to_ptr.vmem [resolvable:$true] %s28_s16 }
   0x4   :  { %s1256_s21 = smov 8   ;;  %s1257_s22 = smov [#allocation2]  }
   0x5   :  { %34 = dma.hbm_to_vmem [thread:$0]  %s27_s14, 4608, %s29_s16, [#allocation6], %s1255_s20, %s1255_s20, %s1256_s21  }
   0x6   :  { %s18_s23 = sshll.u32 %s1257_s22, 4  ;;  %s39_s26 = sshll.u32 %s1476_s2, 4  ;;  %s19_s23 = int_to_ptr.vmem [resolvable:$true] %s18_s23  ;;  %s40_s26 = int_to_ptr.hbm [resolvable:$true] %s39_s26 }
   0x7   :  { %21 = dma.hbm_to_vmem [thread:$0]  %s17_s19, 384, %s19_s23, [#allocation3]  }
   0x8   :  { %s1258_s1 = smov [#allocation7]  }
   0x9   :  { %s41_s27 = sshll.u32 %s1258_s1, 4  ;;  %s42_s27 = int_to_ptr.vmem [resolvable:$true] %s41_s27 }
   0xa   :  { %47 = dma.hbm_to_vmem [thread:$0]  %s40_s26, 4608, %s42_s27, [#allocation6], %s1255_s20, %s1255_s20, %s1256_s21  }
   0xb   :  { %1248 = dma.done.wait [#allocation3], 384  }
   0xc   :  { %1249 = vsyncadd [#allocation3], 4294966912 }
   0xd   :  { %1250 = dma.done.wait [#allocation6], 9216  }
   0xe   :  { %1251 = vsyncadd [#allocation6], 4294958080  ;;  %v838_v0 = vld [vmem:[#allocation5 + $0x70] sm:$0xf]  ;;  %v1089_v1 = vld [vmem:[#allocation5 + $0x74] sm:$0xf0] }
   0xf   :  { %v902_v2 = vld [vmem:[#allocation5 + $0xf0] sm:$0xf]  ;;  %v1289_v3 = vor.u32 %v1089_v1, %v838_v0  ;;  %v1105_v4 = vld [vmem:[#allocation5 + $0xf4] sm:$0xf0]  ;;  %v1088_v9 = vld [vmem:[#allocation5 + $0x74] sm:$0xf] }
  0x10   :  { %v918_v5 = vld [vmem:[#allocation5 + $0x110] sm:$0xf]  ;;  %v1109_v6 = vld [vmem:[#allocation5 + $0x114] sm:$0xf0]  ;;  %v1291_v7 = vor.u32 %v1105_v4, %v902_v2  ;;  %v840_v10 = vld [vmem:[#allocation5 + $0x78] sm:$0xf0] }
  0x11   :  { %v1293_v8 = vor.u32 %v1109_v6, %v918_v5  ;;  %v830_v11 = vld [vmem:[#allocation5 + $0x60] sm:$0xf]  ;;  %331 = vmatpush.bf16.msra.mxu0 %v1289_v3  ;;  %v1296_v12 = vor.u32 %v1088_v9, %v840_v10  ;;  %v1087_v13 = vld [vmem:[#allocation5 + $0x64] sm:$0xf0]  ;;  %v1086_v20 = vld [vmem:[#allocation5 + $0x64] sm:$0xf] }
  0x12   :  { %v894_v14 = vld [vmem:[#allocation5 + $0xe0] sm:$0xf]  ;;  %v1103_v15 = vld [vmem:[#allocation5 + $0xe4] sm:$0xf0]  ;;  %344 = vmatpush.bf16.msra.mxu1 %v1291_v7  ;;  %v1300_v16 = vor.u32 %v1087_v13, %v830_v11  ;;  %v832_v22 = vld [vmem:[#allocation5 + $0x68] sm:$0xf0] }
  0x13   :  { %363 = vmatpush.bf16.msra.mxu2 %v1293_v8  ;;  %v1302_v17 = vor.u32 %v1103_v15, %v894_v14  ;;  %v910_v18 = vld [vmem:[#allocation5 + $0x100] sm:$0xf]  ;;  %v1107_v19 = vld [vmem:[#allocation5 + $0x104] sm:$0xf0]  ;;  %370 = vmatpush.bf16.msra.mxu3 %v1296_v12  ;;  %v1104_v23 = vld [vmem:[#allocation5 + $0xf4] sm:$0xf]  ;;  %v1307_v25 = vor.u32 %v1086_v20, %v832_v22 }
  0x14   :  { %v1305_v21 = vor.u32 %v1107_v19, %v910_v18  ;;  %v904_v24 = vld [vmem:[#allocation5 + $0xf8] sm:$0xf0]  ;;  %v822_v27 = vld [vmem:[#allocation5 + $0x50] sm:$0xf]  ;;  %v1085_v28 = vld [vmem:[#allocation5 + $0x54] sm:$0xf0] }
  0x15   :  { %v1309_v26 = vor.u32 %v1104_v23, %v904_v24  ;;  %v886_v29 = vld [vmem:[#allocation5 + $0xd0] sm:$0xf]  ;;  %332 = vmatpush.bf16.msra.mxu0 %v1300_v16  ;;  %v1312_v30 = vor.u32 %v1085_v28, %v822_v27  ;;  %v1101_v31 = vld [vmem:[#allocation5 + $0xd4] sm:$0xf0]  ;;  %v1084_v32 = vld [vmem:[#allocation5 + $0x54] sm:$0xf] }
  0x16   :  { %v824_v33 = vld [vmem:[#allocation5 + $0x58] sm:$0xf0]  ;;  %345 = vmatpush.bf16.msra.mxu1 %v1302_v17  ;;  %v1316_v34 = vor.u32 %v1101_v31, %v886_v29  ;;  %v1102_v35 = vld [vmem:[#allocation5 + $0xe4] sm:$0xf]  ;;  %v896_v36 = vld [vmem:[#allocation5 + $0xe8] sm:$0xf0] }
  0x17   :  { %364 = vmatpush.bf16.msra.mxu2 %v1305_v21  ;;  %v814_v37 = vld [vmem:[#allocation5 + $0x40] sm:$0xf]  ;;  %371 = vmatpush.bf16.msra.mxu3 %v1307_v25  ;;  %v1320_v38 = vor.u32 %v1084_v32, %v824_v33  ;;  %v1322_v39 = vor.u32 %v1102_v35, %v896_v36  ;;  %v1083_v40 = vld [vmem:[#allocation5 + $0x44] sm:$0xf0]  ;;  %v1082_v43 = vld [vmem:[#allocation5 + $0x44] sm:$0xf] }
  0x18   :  { %v878_v41 = vld [vmem:[#allocation5 + $0xc0] sm:$0xf]  ;;  %v1099_v42 = vld [vmem:[#allocation5 + $0xc4] sm:$0xf0]  ;;  %v816_v44 = vld [vmem:[#allocation5 + $0x48] sm:$0xf0]  ;;  %v1325_v46 = vor.u32 %v1083_v40, %v814_v37 }
  0x19   :  { %v1100_v45 = vld [vmem:[#allocation5 + $0xd4] sm:$0xf]  ;;  %333 = vmatpush.bf16.msra.mxu0 %v1312_v30  ;;  %v888_v47 = vld [vmem:[#allocation5 + $0xd8] sm:$0xf0]  ;;  %v1328_v48 = vor.u32 %v1099_v42, %v878_v41  ;;  %v806_v49 = vld [vmem:[#allocation5 + $0x30] sm:$0xf]  ;;  %v1332_v51 = vor.u32 %v1082_v43, %v816_v44 }
  0x1a   :  { %346 = vmatpush.bf16.msra.mxu1 %v1316_v34  ;;  %v1081_v50 = vld [vmem:[#allocation5 + $0x34] sm:$0xf0]  ;;  %v1334_v52 = vor.u32 %v1100_v45, %v888_v47  ;;  %v870_v53 = vld [vmem:[#allocation5 + $0xb0] sm:$0xf]  ;;  %v1080_v55 = vld [vmem:[#allocation5 + $0x34] sm:$0xf] }
  0x1b   :  { %383 = vmatpush.bf16.msrb.mxu2 %v1309_v26  ;;  %372 = vmatpush.bf16.msra.mxu3 %v1320_v38  ;;  %v1097_v54 = vld [vmem:[#allocation5 + $0xb4] sm:$0xf0]  ;;  %v808_v56 = vld [vmem:[#allocation5 + $0x38] sm:$0xf0]  ;;  %v1098_v57 = vld [vmem:[#allocation5 + $0xc4] sm:$0xf]  ;;  %v1337_v59 = vor.u32 %v1081_v50, %v806_v49 }
  0x1c   :  { %v880_v58 = vld [vmem:[#allocation5 + $0xc8] sm:$0xf0]  ;;  %v1340_v60 = vor.u32 %v1097_v54, %v870_v53  ;;  %v798_v61 = vld [vmem:[#allocation5 + $0x20] sm:$0xf]  ;;  %v1079_v62 = vld [vmem:[#allocation5 + $0x24] sm:$0xf0]  ;;  %v1344_v0 = vor.u32 %v1080_v55, %v808_v56 }
  0x1d   :  { %334 = vmatpush.bf16.msra.mxu0 %v1325_v46  ;;  %v63_v63 = vld [vmem:[#allocation2 + $0x10] sm:$0xff]  ;;  %v1346_v1 = vor.u32 %v1098_v57, %v880_v58  ;;  %v862_v2 = vld [vmem:[#allocation5 + $0xa0] sm:$0xf]  ;;  %v1095_v4 = vld [vmem:[#allocation5 + $0xa4] sm:$0xf0]  ;;  %v1351_v10 = vor.u32 %v1079_v62, %v798_v61  ;;  %vm327_vm0 = vcmask 261120  }
  0x1e   :  { %347 = vmatpush.bf16.msra.mxu1 %v1328_v48  ;;  %v1348_v5 = vpack.c.bf16 %v63_v63, %v63_v63  ;;  %v1078_v6 = vld [vmem:[#allocation5 + $0x24] sm:$0xf]  ;;  %v800_v9 = vld [vmem:[#allocation5 + $0x28] sm:$0xf0]  ;;  %v1096_v13 = vld [vmem:[#allocation5 + $0xb4] sm:$0xf]  ;;  %v1355_v15 = vor.u32 %v1095_v4, %v862_v2 }
  0x1f   :  { %384 = vmatpush.bf16.msrb.mxu2 %v1322_v39  ;;  %373 = vmatpush.bf16.msra.mxu3 %v1332_v51  ;;  %v872_v14 = vld [vmem:[#allocation5 + $0xb8] sm:$0xf0]  ;;  %v790_v18 = vld [vmem:[#allocation5 + $0x10] sm:$0xf]  ;;  %v1077_v19 = vld [vmem:[#allocation5 + $0x14] sm:$0xf0]  ;;  %v1359_v20 = vor.u32 %v1078_v6, %v800_v9 }
  0x20   :  { %v68_v11 = vunpack.c.l.bf16 %v1348_v5  ;;  %v854_v23 = vld [vmem:[#allocation5 + $0x90] sm:$0xf]  ;;  %v1093_v24 = vld [vmem:[#allocation5 + $0x94] sm:$0xf0]  ;;  %v1361_v27 = vor.u32 %v1096_v13, %v872_v14  ;;  %v1076_v28 = vld [vmem:[#allocation5 + $0x14] sm:$0xf]  ;;  %v1366_v33 = vor.u32 %v1077_v19, %v790_v18 }
  0x21   :  { %335 = vmatpush.bf16.msra.mxu0 %v1337_v59  ;;  %v792_v29 = vld [vmem:[#allocation5 + $0x18] sm:$0xf0]  ;;  %v1094_v31 = vld [vmem:[#allocation5 + $0xa4] sm:$0xf]  ;;  %v864_v35 = vld [vmem:[#allocation5 + $0xa8] sm:$0xf0]  ;;  %v1369_v40 = vor.u32 %v1093_v24, %v854_v23 }
  0x22   :  { %348 = vmatpush.bf16.msra.mxu1 %v1340_v60  ;;  %v71_v22 = vsub.f32 %v63_v63, %v68_v11  ;;  %v61_v36 = vld [vmem:[#allocation2] sm:$0xff]  ;;  %v62_v37 = vld [vmem:[#allocation2 + $0x8] sm:$0xff]  ;;  %v782_v41 = vld [vmem:[#allocation5] sm:$0xf]  ;;  %v1376_v45 = vor.u32 %v1076_v28, %v792_v29  ;;  %v1379_v53 = vor.u32 %v1094_v31, %v864_v35  ;;  %s1259_s0 = smov [#allocation8]   ;;  %s769_s30 = sshll.u32 %s1477_s3, 4  ;;  %s770_s30 = int_to_ptr.hbm [resolvable:$true] %s769_s30 }
  0x23   :  { %385 = vmatpush.bf16.msrb.mxu2 %v1334_v52  ;;  %374 = vmatpush.bf16.msra.mxu3 %v1344_v0  ;;  %v1075_v42 = vld [vmem:[#allocation5 + $0x4] sm:$0xf0]  ;;  %v846_v43 = vld [vmem:[#allocation5 + $0x80] sm:$0xf]  ;;  %v1371_v44 = vpack.c.bf16 %v62_v37, %v61_v36  ;;  %v1108_v49 = vld [vmem:[#allocation5 + $0x114] sm:$0xf] }
  0x24   :  { %v1364_v32 = vpack.c.bf16 %v71_v22, %v71_v22  ;;  %v1091_v47 = vld [vmem:[#allocation5 + $0x84] sm:$0xf0]  ;;  %v920_v50 = vld [vmem:[#allocation5 + $0x118] sm:$0xf0]  ;;  %v1074_v54 = vld [vmem:[#allocation5 + $0x4] sm:$0xf]  ;;  %v1384_v58 = vor.u32 %v1075_v42, %v782_v41 }
  0x25   :  { %336 = vmatpush.bf16.msra.mxu0 %v1351_v10  ;;  %v784_v55 = vld [vmem:[#allocation5 + $0x8] sm:$0xf0]  ;;  %v66_v56 = vunpack.c.l.bf16 %v1371_v44  ;;  %v67_v57 = vunpack.c.h.bf16 %v1371_v44  ;;  %v1092_v61 = vld [vmem:[#allocation5 + $0x94] sm:$0xf]  ;;  %v856_v62 = vld [vmem:[#allocation5 + $0x98] sm:$0xf0]  ;;  %v1387_v63 = vor.u32 %v1091_v47, %v846_v43  ;;  %v1389_v2 = vor.u32 %v1108_v49, %v920_v50 }
  0x26   :  { %349 = vmatpush.bf16.msra.mxu1 %v1355_v15  ;;  %924 = vmatmul.msk.bf16.vlgmr.msra.gmra.mxu2 %vm327_vm0, %v1364_v32  ;;  %v1392_v9 = vor.u32 %v1074_v54, %v784_v55  ;;  %v1106_v11 = vld [vmem:[#allocation5 + $0x104] sm:$0xf]  ;;  %v912_v13 = vld [vmem:[#allocation5 + $0x108] sm:$0xf0]  ;;  %v1395_v14 = vor.u32 %v1092_v61, %v856_v62  ;;  %v1117_v47 = vld [vmem:[#allocation7 + $0x34] sm:$0xf0] }
  0x27   :  { %386 = vmatpush.bf16.msrb.mxu2 %v1346_v1  ;;  %375 = vmatpush.bf16.msra.mxu3 %v1359_v20  ;;  %v69_v4 = vsub.f32 %v61_v36, %v66_v56  ;;  %v70_v6 = vsub.f32 %v62_v37, %v67_v57  ;;  %v1090_v22 = vld [vmem:[#allocation5 + $0x84] sm:$0xf]  ;;  %v848_v23 = vld [vmem:[#allocation5 + $0x88] sm:$0xf0]  ;;  %v1400_v24 = vor.u32 %v1106_v11, %v912_v13  ;;  %v1034_v36 = vld [vmem:[#allocation7 + $0xd0] sm:$0xf] }
  0x28   :  { %v1406_v28 = vor.u32 %v1090_v22, %v848_v23  ;;  %v1137_v37 = vld [vmem:[#allocation7 + $0xd4] sm:$0xf0]  ;;  %v1122_v41 = vld [vmem:[#allocation7 + $0x64] sm:$0xf]  ;;  %v980_v42 = vld [vmem:[#allocation7 + $0x68] sm:$0xf0] }
  0x29   :  { %337 = vmatpush.bf16.msra.mxu0 %v1366_v33  ;;  %v72_v18 = vpack.c.bf16 %v69_v4, %v69_v4  ;;  %v73_v19 = vpack.c.bf16 %v70_v6, %v70_v6  ;;  %v983_v49 = vor.u32 %v1122_v41, %v980_v42  ;;  %v1026_v50 = vld [vmem:[#allocation7 + $0xc0] sm:$0xf]  ;;  %v1120_v54 = vld [vmem:[#allocation7 + $0x54] sm:$0xf]  ;;  %v972_v55 = vld [vmem:[#allocation7 + $0x58] sm:$0xf0] }
  0x2a   :  { %350 = vmatpush.bf16.msra.mxu1 %v1369_v40  ;;  %v1140_v56 = vld [vmem:[#allocation7 + $0xf4] sm:$0xf]  ;;  %v1052_v57 = vld [vmem:[#allocation7 + $0xf8] sm:$0xf0]  ;;  %v946_v62 = vld [vmem:[#allocation7 + $0x20] sm:$0xf] }
  0x2b   :  { %387 = vmatpush.bf16.msrb.mxu2 %v1361_v27  ;;  %376 = vmatpush.bf16.msra.mxu3 %v1376_v45  ;;  %v1055_v4 = vor.u32 %v1140_v56, %v1052_v57  ;;  %v1018_v6 = vld [vmem:[#allocation7 + $0xb0] sm:$0xf]  ;;  %v1118_v11 = vld [vmem:[#allocation7 + $0x44] sm:$0xf]  ;;  %v964_v13 = vld [vmem:[#allocation7 + $0x48] sm:$0xf0] }
  0x2c   :  { %v938_v23 = vld [vmem:[#allocation7 + $0x10] sm:$0xf]  ;;  %v1020_v41 = vld [vmem:[#allocation7 + $0xb8] sm:$0xf0]  ;;  %v1142_v42 = vld [vmem:[#allocation7 + $0x104] sm:$0xf] }
  0x2d   :  { %338 = vmatpush.bf16.msra.mxu0 %v1384_v58  ;;  %s767_s2 = sshll.u32 %s1259_s0, 4  ;;  %s768_s2 = int_to_ptr.vmem [resolvable:$true] %s767_s2 }
  0x2e   :  { %351 = vmatpush.bf16.msra.mxu1 %v1387_v63 }
  0x2f   :  { %388 = vmatpush.bf16.msrb.mxu2 %v1379_v53  ;;  %377 = vmatpush.bf16.msra.mxu3 %v1392_v9 }
  0x30   :  { %339 = vmatmul.bf16.vlgmr.msra.gmra.mxu0 %v72_v18 }
  0x31   :  { %402 = vmatpush.bf16.msrb.mxu0 %v1389_v2  ;;  %352 = vmatmul.bf16.vlgmr.msra.gmra.mxu1 %v73_v19 }
  0x32   :  { %422 = vmatpush.bf16.msrb.mxu1 %v1289_v3  ;;  %378 = vmatmul.bf16.vlgmr.msra.gmra.mxu3 %v72_v18  ;;  %v413_v3 = vunpack.c.l.b16 %v1348_v5  ;;  %v1124_v5 = vld [vmem:[#allocation7 + $0x74] sm:$0xf]  ;;  %v1044_v18 = vld [vmem:[#allocation7 + $0xe8] sm:$0xf0] }
  0x33   :  { %389 = vmatpush.bf16.msrb.mxu2 %v1395_v14  ;;  %435 = vmatpush.bf16.msrb.mxu3 %v1291_v7 }
  0x34   :  { %v1430_v7 = vpack.c.b16 %v413_v3, %v413_v3 }
  0x35   :  { %403 = vmatpush.bf16.msrb.mxu0 %v1400_v24 }
  0x36   :  { %423 = vmatpush.bf16.msrb.mxu1 %v1300_v16  ;;  %v411_v16 = vunpack.c.l.b16 %v1371_v44 }
  0x37   :  { %390 = vmatpush.bf16.msrb.mxu2 %v1406_v28  ;;  %436 = vmatpush.bf16.msrb.mxu3 %v1302_v17  ;;  %v412_v17 = vunpack.c.h.b16 %v1371_v44  ;;  %v1035_v44 = vor.u32 %v1137_v37, %v1034_v36  ;;  %v1112_v36 = vld [vmem:[#allocation7 + $0x14] sm:$0xf]  ;;  %v940_v37 = vld [vmem:[#allocation7 + $0x18] sm:$0xf0] }
  0x39   :  { %461 = vmatpush.bf16.msra.mxu0 %v1296_v12  ;;  %v1125_v12 = vld [vmem:[#allocation7 + $0x74] sm:$0xf0] }
  0x3a   :  { %391 = vmatmul.bf16.vlgmr.msrb.gmra.mxu2 %v73_v19  ;;  %424 = vmatpush.bf16.msrb.mxu1 %v1312_v30  ;;  %v1123_v30 = vld [vmem:[#allocation7 + $0x64] sm:$0xf0] }
  0x3b   :  { %454 = vmatpush.bf16.msra.mxu2 %v1293_v8  ;;  %437 = vmatpush.bf16.msrb.mxu3 %v1316_v34  ;;  %v986_v8 = vld [vmem:[#allocation7 + $0x70] sm:$0xf] }
  0x3c   :  { %v1050_v34 = vld [vmem:[#allocation7 + $0xf0] sm:$0xf] }
  0x3d   :  { %462 = vmatpush.bf16.msra.mxu0 %v1307_v25  ;;  %v978_v25 = vld [vmem:[#allocation7 + $0x60] sm:$0xf] }
  0x3e   :  { %425 = vmatpush.bf16.msrb.mxu1 %v1325_v46  ;;  %v1066_v46 = vld [vmem:[#allocation7 + $0x110] sm:$0xf] }
  0x3f   :  { %455 = vmatpush.bf16.msra.mxu2 %v1305_v21  ;;  %438 = vmatpush.bf16.msrb.mxu3 %v1328_v48  ;;  %v987_v21 = vor.u32 %v1125_v12, %v986_v8  ;;  %v1145_v48 = vld [vmem:[#allocation7 + $0x114] sm:$0xf0]  ;;  %v1010_v8 = vld [vmem:[#allocation7 + $0xa0] sm:$0xf]  ;;  %v1131_v12 = vld [vmem:[#allocation7 + $0xa4] sm:$0xf0] }
  0x40   :  { %925 = vmatmul.msk.bf16.vlgmr.msrb.gmra.mxu0 %vm327_vm0, %v1364_v32  ;;  %v962_v32 = vld [vmem:[#allocation7 + $0x40] sm:$0xf] }
  0x41   :  { %463 = vmatpush.bf16.msra.mxu0 %v1320_v38  ;;  %v1141_v38 = vld [vmem:[#allocation7 + $0xf4] sm:$0xf0] }
  0x42   :  { %426 = vmatpush.bf16.msrb.mxu1 %v1337_v59  ;;  %v970_v59 = vld [vmem:[#allocation7 + $0x50] sm:$0xf] }
  0x43   :  { %474 = vmatpush.bf16.msrb.mxu2 %v1309_v26  ;;  %439 = vmatpush.bf16.msrb.mxu3 %v1340_v60  ;;  %v1444_v26 = vpack.c.b16 %v411_v16, %v411_v16  ;;  %v1121_v60 = vld [vmem:[#allocation7 + $0x54] sm:$0xf0]  ;;  %v1116_v16 = vld [vmem:[#allocation7 + $0x34] sm:$0xf] }
  0x44   :  { %v971_v29 = vor.u32 %v1121_v60, %v970_v59  ;;  %v1114_v60 = vld [vmem:[#allocation7 + $0x24] sm:$0xf] }
  0x45   :  { %464 = vmatpush.bf16.msra.mxu0 %v1332_v51  ;;  %v979_v51 = vor.u32 %v1123_v30, %v978_v25  ;;  %v1036_v25 = vld [vmem:[#allocation7 + $0xd8] sm:$0xf0] }
  0x46   :  { %427 = vmatpush.bf16.msrb.mxu1 %v1351_v10  ;;  %v1067_v10 = vor.u32 %v1145_v48, %v1066_v46  ;;  %v1111_v46 = vld [vmem:[#allocation7 + $0x4] sm:$0xf0]  ;;  %v1002_v48 = vld [vmem:[#allocation7 + $0x90] sm:$0xf] }
  0x47   :  { %475 = vmatpush.bf16.msrb.mxu2 %v1322_v39  ;;  %440 = vmatpush.bf16.msrb.mxu3 %v1355_v15  ;;  %v1447_v39 = vpack.c.b16 %v412_v17, %v412_v17  ;;  %v988_v15 = vld [vmem:[#allocation7 + $0x78] sm:$0xf0] }
  0x48   :  { %v991_v35 = vor.u32 %v1124_v5, %v988_v15  ;;  %v956_v17 = vld [vmem:[#allocation7 + $0x38] sm:$0xf0]  ;;  %v948_v5 = vld [vmem:[#allocation7 + $0x28] sm:$0xf0] }
  0x49   :  { %465 = vmatpush.bf16.msra.mxu0 %v1344_v0  ;;  %v1042_v0 = vld [vmem:[#allocation7 + $0xe0] sm:$0xf]  ;;  %v1028_v15 = vld [vmem:[#allocation7 + $0xc8] sm:$0xf0] }
  0x4a   :  { %428 = vmatpush.bf16.msrb.mxu1 %v1366_v33  ;;  %926 = vmatmul.msk.bf16.vlgmr.msra.gmra.mxu2 %vm327_vm0, %v1430_v7  ;;  %v1119_v33 = vld [vmem:[#allocation7 + $0x44] sm:$0xf0] }
  0x4b   :  { %476 = vmatpush.bf16.msrb.mxu2 %v1334_v52  ;;  %441 = vmatpush.bf16.msrb.mxu3 %v1369_v40  ;;  %v1051_v52 = vor.u32 %v1141_v38, %v1050_v34  ;;  %v963_v43 = vor.u32 %v1119_v33, %v962_v32  ;;  %v930_v34 = vld [vmem:[#allocation7] sm:$0xf]  ;;  %v1011_v38 = vor.u32 %v1131_v12, %v1010_v8 }
  0x4c   :  { %v994_v33 = vld [vmem:[#allocation7 + $0x80] sm:$0xf] }
  0x4d   :  { %466 = vmatpush.bf16.msra.mxu0 %v1359_v20  ;;  %v1058_v20 = vld [vmem:[#allocation7 + $0x100] sm:$0xf] }
  0x4e   :  { %429 = vmatpush.bf16.msrb.mxu1 %v1384_v58 }
  0x4f   :  { %477 = vmatpush.bf16.msrb.mxu2 %v1346_v1  ;;  %442 = vmatpush.bf16.msrb.mxu3 %v1387_v63  ;;  %v1139_v1 = vld [vmem:[#allocation7 + $0xe4] sm:$0xf0] }
  0x50   :  { %v1043_v31 = vor.u32 %v1139_v1, %v1042_v0  ;;  %v1115_v63 = vld [vmem:[#allocation7 + $0x24] sm:$0xf0]  ;;  %v1144_v0 = vld [vmem:[#allocation7 + $0x114] sm:$0xf]  ;;  %v1068_v1 = vld [vmem:[#allocation7 + $0x118] sm:$0xf0] }
  0x51   :  { %467 = vmatpush.bf16.msra.mxu0 %v1376_v45  ;;  %430 = vmatmul.bf16.vlgmr.msrb.gmra.mxu1 %v1444_v26  ;;  %v954_v45 = vld [vmem:[#allocation7 + $0x30] sm:$0xf]  ;;  %v947_v19 = vor.u32 %v1115_v63, %v946_v62  ;;  %v1126_v63 = vld [vmem:[#allocation7 + $0x84] sm:$0xf] }
  0x52   :  { %493 = vmatpush.bf16.msra.mxu1 %v1389_v2  ;;  %443 = vmatmul.bf16.vlgmr.msrb.gmra.mxu3 %v1447_v39  ;;  %v955_v58 = vor.u32 %v1117_v47, %v954_v45  ;;  %v975_v2 = vor.u32 %v1120_v54, %v972_v55  ;;  %v943_v45 = vor.u32 %v1112_v36, %v940_v37  ;;  %v1012_v54 = vld [vmem:[#allocation7 + $0xa8] sm:$0xf0] }
  0x53   :  { %478 = vmatpush.bf16.msrb.mxu2 %v1361_v27  ;;  %680 = vmatpush.bf16.msra.mxu3 %v987_v21  ;;  %v1143_v27 = vld [vmem:[#allocation7 + $0x104] sm:$0xf0]  ;;  %v1136_v21 = vld [vmem:[#allocation7 + $0xd4] sm:$0xf] }
  0x54   :  { %v1059_v40 = vor.u32 %v1143_v27, %v1058_v20  ;;  %v1039_v59 = vor.u32 %v1136_v21, %v1036_v25  ;;  %v931_v20 = vor.u32 %v1111_v46, %v930_v34 }
  0x55   :  { %468 = vmatpush.bf16.msra.mxu0 %v1392_v9  ;;  %v1133_v9 = vld [vmem:[#allocation7 + $0xb4] sm:$0xf0] }
  0x56   :  { %494 = vmatpush.bf16.msra.mxu1 %v1400_v24  ;;  %v1019_v22 = vor.u32 %v1133_v9, %v1018_v6  ;;  %v1113_v24 = vld [vmem:[#allocation7 + $0x14] sm:$0xf0] }
  0x57   :  { %479 = vmatpush.bf16.msrb.mxu2 %v1379_v53  ;;  %681 = vmatpush.bf16.msra.mxu3 %v979_v51  ;;  %v1135_v53 = vld [vmem:[#allocation7 + $0xc4] sm:$0xf0]  ;;  %v939_v30 = vor.u32 %v1113_v24, %v938_v23  ;;  %v1129_v51 = vld [vmem:[#allocation7 + $0x94] sm:$0xf0] }
  0x58   :  { %469 = vmatmul.bf16.vlgmr.msra.gmra.mxu0 %v1444_v26  ;;  %v1027_v61 = vor.u32 %v1135_v53, %v1026_v50  ;;  %v1003_v27 = vor.u32 %v1129_v51, %v1002_v48  ;;  %v932_v50 = vld [vmem:[#allocation7 + $0x8] sm:$0xf0]  ;;  %v1130_v53 = vld [vmem:[#allocation7 + $0xa4] sm:$0xf] }
  0x59   :  { %693 = vmatpush.bf16.msrb.mxu0 %v1051_v52  ;;  %v959_v52 = vor.u32 %v1116_v16, %v956_v17  ;;  %v1015_v57 = vor.u32 %v1130_v53, %v1012_v54 }
  0x5a   :  { %712 = vmatpush.bf16.msrb.mxu1 %v1067_v10  ;;  %v1134_v10 = vld [vmem:[#allocation7 + $0xc4] sm:$0xf] }
  0x5b   :  { %480 = vmatpush.bf16.msrb.mxu2 %v1395_v14  ;;  %682 = vmatpush.bf16.msra.mxu3 %v971_v29  ;;  %v1138_v14 = vld [vmem:[#allocation7 + $0xe4] sm:$0xf]  ;;  %v1071_v29 = vor.u32 %v1144_v0, %v1068_v1  ;;  %v1031_v32 = vor.u32 %v1134_v10, %v1028_v15 }
  0x5c   :  { %v1047_v3 = vor.u32 %v1138_v14, %v1044_v18 }
  0x5d   :  { %694 = vmatpush.bf16.msrb.mxu0 %v1043_v31  ;;  %v951_v31 = vor.u32 %v1114_v60, %v948_v5 }
  0x5e   :  { %713 = vmatpush.bf16.msrb.mxu1 %v1059_v40  ;;  %v1132_v40 = vld [vmem:[#allocation7 + $0xb4] sm:$0xf] }
  0x5f   :  { %481 = vmatpush.bf16.msrb.mxu2 %v1406_v28  ;;  %683 = vmatpush.bf16.msra.mxu3 %v963_v43  ;;  %v967_v28 = vor.u32 %v1118_v11, %v964_v13  ;;  %v1060_v43 = vld [vmem:[#allocation7 + $0x108] sm:$0xf0]  ;;  %v1023_v47 = vor.u32 %v1132_v40, %v1020_v41 }
  0x60   :  { %v1063_v55 = vor.u32 %v1142_v42, %v1060_v43 }
  0x61   :  { %695 = vmatpush.bf16.msrb.mxu0 %v1035_v44  ;;  %927 = vmatmul.msk.bf16.vlgmr.msra.gmra.mxu1 %vm327_vm0, %v1430_v7 }
  0x62   :  { %482 = vmatmul.bf16.vlgmr.msrb.gmra.mxu2 %v1447_v39  ;;  %732 = vmatpush.bf16.msra.mxu1 %v1055_v4 }
  0x63   :  { %719 = vmatpush.bf16.msra.mxu2 %v991_v35  ;;  %684 = vmatpush.bf16.msra.mxu3 %v955_v58  ;;  %v1127_v35 = vld [vmem:[#allocation7 + $0x84] sm:$0xf0]  ;;  %v1128_v58 = vld [vmem:[#allocation7 + $0x94] sm:$0xf] }
  0x64   :  { %v995_v44 = vor.u32 %v1127_v35, %v994_v33 }
  0x65   :  { %696 = vmatpush.bf16.msrb.mxu0 %v1027_v61  ;;  %v1004_v61 = vld [vmem:[#allocation7 + $0x98] sm:$0xf0] }
  0x66   :  { %733 = vmatpush.bf16.msra.mxu1 %v1047_v3  ;;  %v1007_v62 = vor.u32 %v1128_v58, %v1004_v61 }
  0x67   :  { %720 = vmatpush.bf16.msra.mxu2 %v983_v49  ;;  %685 = vmatpush.bf16.msra.mxu3 %v947_v19  ;;  %v1110_v49 = vld [vmem:[#allocation7 + $0x4] sm:$0xf] }
  0x68   :  { %v935_v56 = vor.u32 %v1110_v49, %v932_v50 }
  0x69   :  { %697 = vmatpush.bf16.msrb.mxu0 %v1019_v22 }
  0x6a   :  { %734 = vmatpush.bf16.msra.mxu1 %v1039_v59 }
  0x6b   :  { %721 = vmatpush.bf16.msra.mxu2 %v975_v2  ;;  %686 = vmatpush.bf16.msra.mxu3 %v939_v30  ;;  %v996_v2 = vld [vmem:[#allocation7 + $0x88] sm:$0xf0] }
  0x6c   :  { %v999_v4 = vor.u32 %v1126_v63, %v996_v2 }
  0x6d   :  { %698 = vmatpush.bf16.msrb.mxu0 %v1011_v38 }
  0x6e   :  { %735 = vmatpush.bf16.msra.mxu1 %v1031_v32 }
  0x6f   :  { %722 = vmatpush.bf16.msra.mxu2 %v967_v28  ;;  %687 = vmatpush.bf16.msra.mxu3 %v931_v20 }
  0x71   :  { %699 = vmatpush.bf16.msrb.mxu0 %v1003_v27  ;;  %1072 = vmatmul.msk.bf16.vlgmr.msrb.gmra.mxu1 %vm327_vm0, %v1430_v7 }
  0x72   :  { %688 = vmatmul.bf16.vlgmr.msra.gmra.mxu3 %v1444_v26  ;;  %736 = vmatpush.bf16.msra.mxu1 %v1023_v47 }
  0x73   :  { %723 = vmatpush.bf16.msra.mxu2 %v959_v52  ;;  %751 = vmatpush.bf16.msrb.mxu3 %v1071_v29 }
  0x75   :  { %700 = vmatpush.bf16.msrb.mxu0 %v995_v44 }
  0x76   :  { %737 = vmatpush.bf16.msra.mxu1 %v1015_v57 }
  0x77   :  { %724 = vmatpush.bf16.msra.mxu2 %v951_v31  ;;  %752 = vmatpush.bf16.msrb.mxu3 %v1063_v55 }
  0x78   :  { %701 = vmatmul.bf16.vlgmr.msrb.gmra.mxu0 %v1447_v39 }
  0x7a   :  { %738 = vmatpush.bf16.msra.mxu1 %v1007_v62 }
  0x7b   :  { %725 = vmatpush.bf16.msra.mxu2 %v943_v45 }
  0x7e   :  { %739 = vmatpush.bf16.msra.mxu1 %v999_v4 }
  0x7f   :  { %726 = vmatpush.bf16.msra.mxu2 %v935_v56 }
  0x81   :  { %740 = vmatmul.bf16.vlgmr.msra.gmra.mxu1 %v1447_v39 }
  0x82   :  { %727 = vmatmul.bf16.vlgmr.msra.gmra.mxu2 %v1444_v26  ;;  %1073 = vmatmul.msk.bf16.vlgmr.msrb.gmra.mxu3 %vm327_vm0, %v1430_v7 }
  0xa9   :  { %v366_v6 = vpop.f32.mrf.mxu2 }
  0xad   :  { %v340_v9 = vpop.f32.mrf.mxu0 }
  0xae   :  { %v353_v11 = vpop.f32.mrf.mxu1 }
  0xaf   :  { %v354_v46 = vadd.f32 %v353_v11, %v340_v9 }
  0xb1   :  { %v368_v13 = vpop.f32.mrf.mxu2  ;;  %v367_v48 = vadd.f32 %v366_v6, %v354_v46 }
  0xb5   :  { %v379_v14 = vpop.f32.mrf.mxu3  ;;  %v342_v18 = vpop.f32.mrf.mxu0 }
  0xb6   :  { %v355_v19 = vpop.f32.mrf.mxu1 }
  0xbd   :  { %v392_v22 = vpop.f32.mrf.mxu2  ;;  %v381_v23 = vpop.f32.mrf.mxu3 }
  0xbe   :  { %v405_v24 = vpop.f32.mrf.mxu0  ;;  %v393_v20 = vadd.f32 %v392_v22, %v379_v14 }
  0xc0   :  { %v406_v32 = vadd.f32 %v405_v24, %v393_v20 }
  0xc5   :  { %v394_v28 = vpop.f32.mrf.mxu2 }
  0xc6   :  { %v407_v26 = vpop.f32.mrf.mxu0 }
  0xcd   :  { %v457_v3 = vpop.f32.mrf.mxu2 }
  0xce   :  { %v431_v8 = vpop.f32.mrf.mxu1 }
  0xcf   :  { %v432_v52 = vadd.f32 %v431_v8, %v367_v48 }
  0xd5   :  { %v470_v12 = vpop.f32.mrf.mxu0  ;;  %v444_v16 = vpop.f32.mrf.mxu3 }
  0xd6   :  { %v459_v17 = vpop.f32.mrf.mxu2  ;;  %v433_v7 = vpop.f32.mrf.mxu1  ;;  %v445_v59 = vadd.f32 %v444_v16, %v432_v52  ;;  %v471_v35 = vadd.f32 %v470_v12, %v406_v32 }
  0xd8   :  { %v458_v5 = vadd.f32 %v457_v3, %v445_v59 }
  0xdd   :  { %v472_v21 = vpop.f32.mrf.mxu0  ;;  %v446_v39 = vpop.f32.mrf.mxu3 }
  0xde   :  { %v496_v25 = vpop.f32.mrf.mxu1 }
  0xe5   :  { %v483_v30 = vpop.f32.mrf.mxu2 }
  0xe6   :  { %v498_v34 = vpop.f32.mrf.mxu1  ;;  %v484_v37 = vadd.f32 %v483_v30, %v471_v35 }
  0xe8   :  { %v497_v42 = vadd.f32 %v496_v25, %v484_v37 }
  0xed   :  { %v485_v38 = vpop.f32.mrf.mxu2 }
  0xee   :  { %v715_v51 = vpop.f32.mrf.mxu1 }
  0xf5   :  { %v702_v60 = vpop.f32.mrf.mxu0  ;;  %v689_v0 = vpop.f32.mrf.mxu3 }
  0xf6   :  { %v703_v1 = vadd.f32 %v702_v60, %v689_v0  ;;  %v717_v15 = vpop.f32.mrf.mxu1 }
  0xf8   :  { %v716_v10 = vadd.f32 %v715_v51, %v703_v1 }
  0xfa   :  { %v758_v27 = vadd.f32 %v716_v10, %v458_v5 }
  0xfc   :  { %760 = vst [vmem:[#allocation8] sm:$0xff] %v758_v27 }
  0xfd   :  { %v704_v29 = vpop.f32.mrf.mxu0  ;;  %v691_v31 = vpop.f32.mrf.mxu3 }
  0xfe   :  { %v741_v36 = vpop.f32.mrf.mxu1 }
 0x105   :  { %v728_v33 = vpop.f32.mrf.mxu2  ;;  %v754_v41 = vpop.f32.mrf.mxu3 }
 0x106   :  { %v742_v40 = vadd.f32 %v741_v36, %v728_v33  ;;  %v743_v47 = vpop.f32.mrf.mxu1 }
 0x108   :  { %v755_v43 = vadd.f32 %v754_v41, %v742_v40 }
 0x10a   :  { %v759_v45 = vadd.f32 %v755_v43, %v497_v42 }
 0x10c   :  { %761 = vst [vmem:[#allocation8 + $0x8] sm:$0xff] %v759_v45 }
 0x10d   :  { %v730_v44 = vpop.f32.mrf.mxu2  ;;  %772 = dma.vmem_to_hbm [thread:$0]  %s768_s2, 256, %s770_s30, [#allocation4]   ;;  %v756_v49 = vpop.f32.mrf.mxu3 }
 0x10e   :  { %1252 = dma.done.wait [#allocation4], 256  }
 0x10f   :  { %1253 = vsyncadd [#allocation4], 4294967040 }
 0x110   :  { %777 = vsyncpa [#allocation3], 1 }
 0x111   :  { %778 = vsyncpa [#allocation6], 1 }
 0x112   :  { %779 = vsyncpa [#allocation4], 1 }

</bundles_post_ra>
